<compile_context>
chip_gen: v7x
topology: tpu7x:2x2x1
jax: 0.10.0
libtpu: 0.0.40
codegen_flags: <defaults>
</compile_context>

<pallas_src>
import numpy as np
import jax
import jax.numpy as jnp
from jax.experimental import pallas as pl
from jax.experimental.pallas import tpu as pltpu

B = 8  # demo batch (sublane-aligned)

# ----------------------------- layer catalogue --------------------------------
LAYERS = [  # (name, in_dim, out_dim)
    ("dir_cond", 8, 12),
    ("branch_cond", 12, 16),
    ("ord_ratio_mlp", 1, 20),
    ("mean_elapsed_total_mlp", 1, 2),
    ("mean_elapsed_wd_mlp", 5, 4),
    ("mean_elapsed_tg_mlp", 9, 4),
    ("mean_elapsed_wdtg_mlp", 13, 6),
    ("mean_elapsed_merge", 16, 32),
    ("ord_ratio_cond", 16, 20),
    ("route_cond", 20, 32),
    ("mean_interval_total_mlp", 1, 2),
    ("mean_interval_wd_mlp", 5, 4),
    ("mean_interval_tg_mlp", 9, 4),
    ("mean_interval_wdtg_mlp", 13, 6),
    ("mean_interval_merge", 16, 16),
    ("node_cond", 8, 16),
    ("time_mlp", 26, 16),
    ("weather_mlp", 5, 8),
    ("prev_pred_mlp_0", 1, 4),
    ("prev_pred_mlp_1", 4, 16),
    ("final_mlp_0", 88, 64),
    ("final_mlp_1", 64, 32),
    ("head_mean", 32, 1),
    ("head_logvar", 32, 1),
]

EMBEDDINGS = [  # (name, vocab, dim)
    ("bus_emb", 200, 8),
    ("dir_raw_emb", 5, 12),
    ("branch_raw_emb", 10, 16),
    ("node_emb", 3000, 8),
    ("pty_emb", 10, 3),
    ("weekday_index_emb", 5, 4),
    ("timegroup_index_emb", 10, 8),
    ("wd_tg_index_emb", 40, 12),
]

EMB_FEATS = [("bus_emb", "bus_number"), ("dir_raw_emb", "direction"),
             ("branch_raw_emb", "branch"), ("node_emb", "node_id"),
             ("pty_emb", "weather_PTY"), ("weekday_index_emb", "weekday"),
             ("timegroup_index_emb", "timegroup"),
             ("wd_tg_index_emb", "weekday_timegroup")]

FLOAT_FEATS = ["ord_ratio", "mean_elapsed_total", "mean_elapsed_weekday",
               "mean_elapsed_timegroup", "mean_elapsed_wd_tg",
               "mean_interval_total", "mean_interval_weekday",
               "mean_interval_timegroup", "mean_interval_wd_tg",
               "departure_time_sin", "departure_time_cos",
               "weather_RN1", "weather_T1H", "prev_pred_elapsed"]

# ----------------------------- feature slab layout (lanes) --------------------
F_BUS, F_DIRRAW, F_BRRAW, F_NODE = 0, 8, 20, 36
F_PTY, F_WD, F_TG, F_WDTG = 44, 47, 51, 59
F_ORD, F_MET, F_MEWD, F_METG, F_MEWDTG = 71, 72, 73, 74, 75
F_MIT, F_MIWD, F_MITG, F_MIWDTG = 76, 77, 78, 79
F_SIN, F_COS, F_RN1, F_T1H, F_PREV = 80, 81, 82, 83, 84
F_TOTAL, F_CONST, F_PAD = 85, 127, 128          # lane 127 == constant 1.0

# ----------------------------- stage-A (Y1) output column layout --------------
Y1_DIRADJ = 0      # 12  dir_cond(bus)                               (no relu)
Y1_BRDIR = 12      # 16  dir_raw @ W_branch_cond   (partial term)    (no relu)
Y1_MET = 28        # 2
Y1_MEWD = 30       # 4
Y1_METG = 34       # 4
Y1_MEWDTG = 38     # 6
Y1_MIT = 44        # 2
Y1_MIWD = 46       # 4
Y1_MITG = 50       # 4
Y1_MIWDTG = 54     # 6
Y1_ORDRAW = 60     # 20  ord_ratio_mlp
Y1_NODE = 80       # 16  node_cond
Y1_TIME = 96       # 16  time_mlp
Y1_WEATH = 112     # 8   weather_mlp
Y1_PREV0 = 120     # 4   prev_pred_mlp[0]
Y1_RELU_START = 28  # lane 127 carries the constant 1 (relu(1)=1, harmless)

# ----------------------------- stage-B (Y2) output column layout --------------
Y2_BRADJ = 0       # 16  dir_adj @ W_branch_cond + b_branch          (no relu)
Y2_ME = 16         # 32  mean_elapsed_merge
Y2_MI = 48         # 16  mean_interval_merge
Y2_PREV = 64       # 16  prev_pred_mlp[1]
Y2_RELU_START = 16

# ----------------------------- weight-slab block indices ----------------------
(W_A, W_B, W_OC_F, W_OC_Y1, W_OC_Y2, W_RC_Y3, W_RC_Y1,
 W_F0_Y4, W_F0_Y1, W_F0_Y2, W_F1, W_H) = range(12)
N_WBLK = 12
W_ROWS = N_WBLK * 128                            # 2D slab: (1536, 128) bf16


# ================================ kernel =======================================
def eta_kernel(feat_ref, w_ref, out_ref):
    col = jax.lax.broadcasted_iota(jnp.int32, (1, 128), 1)
    featb = feat_ref[...]                        # (TM, 128) bf16, lane 127 = 1.0

    def mm(xb, blk):
        w = w_ref[blk * 128:(blk + 1) * 128, :]  # static, tile-aligned slice
        return jnp.dot(xb, w, preferred_element_type=jnp.float32)

    # ---- stage A: all first-level linears in one block-diagonal matmul -------
    y1 = mm(featb, W_A)                          # (TM, 128) f32
    y1 = jnp.where(col >= Y1_RELU_START, jnp.maximum(y1, 0.0), y1)
    y1b = y1.astype(jnp.bfloat16)

    # ---- stage B: branch_cond / merges / prev_pred_mlp[1] fused --------------
    y2 = mm(y1b, W_B)
    y2 = jnp.where(col >= Y2_RELU_START, jnp.maximum(y2, 0.0), y2)
    y2b = y2.astype(jnp.bfloat16)

    # ---- ord_ratio_cond: branch term assembled by weight distribution --------
    y3 = jnp.maximum(mm(featb, W_OC_F) + mm(y1b, W_OC_Y1) + mm(y2b, W_OC_Y2), 0.0)
    y3b = y3.astype(jnp.bfloat16)

    # ---- route_cond: ord_ratio = ord_adj + ord_ratio_raw, distributed --------
    y4 = jnp.maximum(mm(y3b, W_RC_Y3) + mm(y1b, W_RC_Y1), 0.0)
    y4b = y4.astype(jnp.bfloat16)

    # ---- final_mlp[0]: full_input (88) assembled by weight distribution ------
    h1 = jnp.maximum(mm(y4b, W_F0_Y4) + mm(y1b, W_F0_Y1) + mm(y2b, W_F0_Y2), 0.0)
    h2 = jnp.maximum(mm(h1.astype(jnp.bfloat16), W_F1), 0.0)
    y7 = mm(h2.astype(jnp.bfloat16), W_H)        # col 0 = mean logit, col 1 = logvar

    # lane-dense single output: col 0 -> sigmoid, everything else -> clamp
    out_ref[...] = jnp.where(col == 0, jax.nn.sigmoid(y7),
                             jnp.clip(y7, -10.0, 5.0))


# ================================ wrapper ======================================
def pack_features(x, tables):
    bsz = x["bus_number"].shape[0]
    embs = [jnp.take(tables[t], x[k], axis=0) for t, k in EMB_FEATS]
    scalars = jnp.concatenate([x[n] for n in FLOAT_FEATS], axis=1)   # (B, 14)
    pad = jnp.zeros((bsz, F_CONST - F_TOTAL), jnp.float32)
    const = jnp.ones((bsz, 1), jnp.float32)                          # lane 127
    return jnp.concatenate(embs + [scalars, pad, const], axis=1)     # (B, 128)


@jax.jit
def first_eta_forward_pallas(x, tables, wslab):
    feat = pack_features(x, tables).astype(jnp.bfloat16)             # MXU operand
    bsz = feat.shape[0]
    tm = min(128, ((bsz + 7) // 8) * 8)          # batch tile (sublane-aligned)
    padded = ((bsz + tm - 1) // tm) * tm
    if padded != bsz:
        feat = jnp.pad(feat, ((0, padded - bsz), (0, 0)))

    cost = pl.CostEstimate(
        flops=2 * padded * 128 * 128 * N_WBLK,
        transcendentals=padded * 128,
        bytes_accessed=padded * 128 * 2 + W_ROWS * 128 * 2 + padded * 128 * 4)

    out = pl.pallas_call(
        eta_kernel,
        out_shape=jax.ShapeDtypeStruct((padded, 128), jnp.float32),
        grid=(padded // tm,),
        in_specs=[pl.BlockSpec((tm, 128), lambda i: (i, 0)),
                  pl.BlockSpec((W_ROWS, 128), lambda i: (0, 0))],   # weights resident
        out_specs=pl.BlockSpec((tm, 128), lambda i: (i, 0)),
        compiler_params=pltpu.CompilerParams(dimension_semantics=("parallel",)),
        cost_estimate=cost,
    )(feat, wslab)
    return out[:bsz, 0:1], out[:bsz, 1:2]


# ================================ param packing ================================
def pack_params(params):
    slab = np.zeros((W_ROWS, 128), np.float32)

    def put(blk, row0, col0, W):
        W = np.asarray(W, np.float32)
        slab[blk * 128 + row0: blk * 128 + row0 + W.shape[0],
             col0: col0 + W.shape[1]] = W

    def putb(blk, col0, b):
        b = np.asarray(b, np.float32).reshape(-1)
        slab[blk * 128 + 127, col0: col0 + b.shape[0]] += b

    def const1(blk):
        slab[blk * 128 + 127, 127] = 1.0         # propagate constant-1 lane

    # ---- stage A: feat -> y1 (biases in row 127; feat lane 127 == 1) ---------
    W, b = params["dir_cond"];                put(W_A, F_BUS, Y1_DIRADJ, W);                                       putb(W_A, Y1_DIRADJ, b)
    Wbr, bbr = params["branch_cond"];         put(W_A, F_DIRRAW, Y1_BRDIR, Wbr)   # bias added in stage B
    W, b = params["mean_elapsed_total_mlp"];  put(W_A, F_MET, Y1_MET, W);                                          putb(W_A, Y1_MET, b)
    W, b = params["mean_elapsed_wd_mlp"];     put(W_A, F_MEWD, Y1_MEWD, W[:1]);   put(W_A, F_WD, Y1_MEWD, W[1:]);  putb(W_A, Y1_MEWD, b)
    W, b = params["mean_elapsed_tg_mlp"];     put(W_A, F_METG, Y1_METG, W[:1]);   put(W_A, F_TG, Y1_METG, W[1:]);  putb(W_A, Y1_METG, b)
    W, b = params["mean_elapsed_wdtg_mlp"];   put(W_A, F_MEWDTG, Y1_MEWDTG, W[:1]); put(W_A, F_WDTG, Y1_MEWDTG, W[1:]); putb(W_A, Y1_MEWDTG, b)
    W, b = params["mean_interval_total_mlp"]; put(W_A, F_MIT, Y1_MIT, W);                                          putb(W_A, Y1_MIT, b)
    W, b = params["mean_interval_wd_mlp"];    put(W_A, F_MIWD, Y1_MIWD, W[:1]);   put(W_A, F_WD, Y1_MIWD, W[1:]);  putb(W_A, Y1_MIWD, b)
    W, b = params["mean_interval_tg_mlp"];    put(W_A, F_MITG, Y1_MITG, W[:1]);   put(W_A, F_TG, Y1_MITG, W[1:]);  putb(W_A, Y1_MITG, b)
    W, b = params["mean_interval_wdtg_mlp"];  put(W_A, F_MIWDTG, Y1_MIWDTG, W[:1]); put(W_A, F_WDTG, Y1_MIWDTG, W[1:]); putb(W_A, Y1_MIWDTG, b)
    W, b = params["ord_ratio_mlp"];           put(W_A, F_ORD, Y1_ORDRAW, W);                                       putb(W_A, Y1_ORDRAW, b)
    W, b = params["node_cond"];               put(W_A, F_NODE, Y1_NODE, W);                                        putb(W_A, Y1_NODE, b)
    W, b = params["time_mlp"];                put(W_A, F_WD, Y1_TIME, W[:24]);    put(W_A, F_SIN, Y1_TIME, W[24:]); putb(W_A, Y1_TIME, b)
    W, b = params["weather_mlp"];             put(W_A, F_PTY, Y1_WEATH, W[:3]);   put(W_A, F_RN1, Y1_WEATH, W[3:]); putb(W_A, Y1_WEATH, b)
    W, b = params["prev_pred_mlp_0"];         put(W_A, F_PREV, Y1_PREV0, W);                                       putb(W_A, Y1_PREV0, b)
    const1(W_A)                                # y1[:,127] = 1

    # ---- stage B: y1 -> y2 -----------------------------------------------------
    put(W_B, Y1_DIRADJ, Y2_BRADJ, Wbr);                             putb(W_B, Y2_BRADJ, bbr)
    W, b = params["mean_elapsed_merge"];      put(W_B, Y1_MET, Y2_ME, W);    putb(W_B, Y2_ME, b)
    W, b = params["mean_interval_merge"];     put(W_B, Y1_MIT, Y2_MI, W);    putb(W_B, Y2_MI, b)
    W, b = params["prev_pred_mlp_1"];         put(W_B, Y1_PREV0, Y2_PREV, W); putb(W_B, Y2_PREV, b)

    # ---- ord_ratio_cond: branch = feat[BRRAW] + y1[BRDIR] + y2[BRADJ] ----------
    Woc, boc = params["ord_ratio_cond"]
    put(W_OC_F, F_BRRAW, 0, Woc);  putb(W_OC_F, 0, boc)
    put(W_OC_Y1, Y1_BRDIR, 0, Woc)
    put(W_OC_Y2, Y2_BRADJ, 0, Woc)

    # ---- route_cond: ord_ratio = y3[:, :20] + y1[ORDRAW] ----------------------
    Wrc, brc = params["route_cond"]
    put(W_RC_Y3, 0, 0, Wrc)
    put(W_RC_Y1, Y1_ORDRAW, 0, Wrc);  putb(W_RC_Y1, 0, brc)

    # ---- final_mlp[0]: full_input(88) = [route|node|time|weather|prev] --------
    Wf0, bf0 = params["final_mlp_0"]
    put(W_F0_Y4, 0, 0, Wf0[0:32])              # route_context (route_adj part)
    put(W_F0_Y2, Y2_ME, 0, Wf0[0:32])          # route_context (mean_elapsed part)
    put(W_F0_Y1, Y1_NODE, 0, Wf0[32:48])       # node_context (node_cond part)
    put(W_F0_Y2, Y2_MI, 0, Wf0[32:48])         # node_context (mean_interval part)
    put(W_F0_Y1, Y1_TIME, 0, Wf0[48:64])       # time_context
    put(W_F0_Y1, Y1_WEATH, 0, Wf0[64:72])      # weather_context
    put(W_F0_Y2, Y2_PREV, 0, Wf0[72:88])       # prev_eta
    putb(W_F0_Y1, 0, bf0)
    const1(W_F0_Y1)                            # h1[:,127] = 1

    # ---- final_mlp[2] + fused heads --------------------------------------------
    Wf1, bf1 = params["final_mlp_1"]
    put(W_F1, 0, 0, Wf1);  putb(W_F1, 0, bf1);  const1(W_F1)        # h2[:,127] = 1

    Wm, bm = params["head_mean"]
    Wl, bl = params["head_logvar"]
    put(W_H, 0, 0, Wm); put(W_H, 0, 1, Wl)
    putb(W_H, 0, bm);   putb(W_H, 1, bl)

    return jnp.asarray(slab, dtype=jnp.bfloat16)   # MXU-native bf16 slab


# ----------------------------- reference (pure JAX, f32) -----------------------
def first_eta_forward_ref(x, tables, params):
    def lin(name, v, relu=False):
        W, b = params[name]
        y = v @ W + b
        return jnp.maximum(y, 0.0) if relu else y

    bus = jnp.take(tables["bus_emb"], x["bus_number"], axis=0)
    direction = jnp.take(tables["dir_raw_emb"], x["direction"], axis=0) + lin("dir_cond", bus)
    branch = jnp.take(tables["branch_raw_emb"], x["branch"], axis=0) + lin("branch_cond", direction)
    ord_ratio = lin("ord_ratio_cond", branch, True) + lin("ord_ratio_mlp", x["ord_ratio"], True)
    wd_e = jnp.take(tables["weekday_index_emb"], x["weekday"], axis=0)
    tg_e = jnp.take(tables["timegroup_index_emb"], x["timegroup"], axis=0)
    wdtg_e = jnp.take(tables["wd_tg_index_emb"], x["weekday_timegroup"], axis=0)
    me = lin("mean_elapsed_merge", jnp.concatenate([
        lin("mean_elapsed_total_mlp", x["mean_elapsed_total"], True),
        lin("mean_elapsed_wd_mlp", jnp.concatenate([x["mean_elapsed_weekday"], wd_e], 1), True),
        lin("mean_elapsed_tg_mlp", jnp.concatenate([x["mean_elapsed_timegroup"], tg_e], 1), True),
        lin("mean_elapsed_wdtg_mlp", jnp.concatenate([x["mean_elapsed_wd_tg"], wdtg_e], 1), True)], 1), True)
    route_context = lin("route_cond", ord_ratio, True) + me
    node = jnp.take(tables["node_emb"], x["node_id"], axis=0)
    mi = lin("mean_interval_merge", jnp.concatenate([
        lin("mean_interval_total_mlp", x["mean_interval_total"], True),
        lin("mean_interval_wd_mlp", jnp.concatenate([x["mean_interval_weekday"], wd_e], 1), True),
        lin("mean_interval_tg_mlp", jnp.concatenate([x["mean_interval_timegroup"], tg_e], 1), True),
        lin("mean_interval_wdtg_mlp", jnp.concatenate([x["mean_interval_wd_tg"], wdtg_e], 1), True)], 1), True)
    node_context = lin("node_cond", node, True) + mi
    time_context = lin("time_mlp", jnp.concatenate(
        [wd_e, tg_e, wdtg_e, x["departure_time_sin"], x["departure_time_cos"]], 1), True)
    pty = jnp.take(tables["pty_emb"], x["weather_PTY"], axis=0)
    weather_context = lin("weather_mlp", jnp.concatenate([pty, x["weather_RN1"], x["weather_T1H"]], 1), True)
    prev_eta = lin("prev_pred_mlp_1", lin("prev_pred_mlp_0", x["prev_pred_elapsed"], True), True)
    full = jnp.concatenate([route_context, node_context, time_context, weather_context, prev_eta], 1)
    h = lin("final_mlp_1", lin("final_mlp_0", full, True), True)
    return jax.nn.sigmoid(lin("head_mean", h)), jnp.clip(lin("head_logvar", h), -10.0, 5.0)


# ----------------------------- init & main --------------------------------------
def init_all(key):
    tables, params = {}, {}
    for name, vocab, dim in EMBEDDINGS:
        key, k = jax.random.split(key)
        tables[name] = jax.random.normal(k, (vocab, dim), jnp.float32)
    for name, fin, fout in LAYERS:
        key, kw, kb = jax.random.split(key, 3)
        bound = 1.0 / np.sqrt(fin)
        W = jax.random.uniform(kw, (fin, fout), jnp.float32, -bound, bound)
        b = jax.random.uniform(kb, (fout,), jnp.float32, -bound, bound)
        params[name] = (W, b)
    return tables, params, key


def make_inputs(key):
    x = {}
    int_feats = [("bus_number", 200), ("direction", 5), ("branch", 10),
                 ("node_id", 3000), ("weekday", 5), ("timegroup", 10),
                 ("weekday_timegroup", 40), ("weather_PTY", 10)]
    for name, hi in int_feats:
        key, k = jax.random.split(key)
        x[name] = jax.random.randint(k, (B,), 0, hi, dtype=jnp.int32)
    for name in FLOAT_FEATS:
        key, k = jax.random.split(key)
        x[name] = jax.random.uniform(k, (B, 1), jnp.float32, -1.0, 1.0)
    return x


if __name__ == "__main__":
    key = jax.random.PRNGKey(0)
    tables, params, key = init_all(key)
    x = make_inputs(key)
    wslab = pack_params(params)            # one-time host-side packing (bf16)

    pred_mean, pred_logvar = first_eta_forward_pallas(x, tables, wslab)
    jax.block_until_ready((pred_mean, pred_logvar))

    ref_mean, ref_logvar = first_eta_forward_ref(x, tables, params)
    # bf16 MXU operands -> loosened tolerance (per perf review)
    np.testing.assert_allclose(np.asarray(pred_mean), np.asarray(ref_mean),
                               rtol=5e-2, atol=5e-2)
    np.testing.assert_allclose(np.asarray(pred_logvar), np.asarray(ref_logvar),
                               rtol=5e-2, atol=5e-2)
    assert pred_mean.shape == (B, 1) and pred_logvar.shape == (B, 1)
    print("KERNEL_OK")
</pallas_src>

<mosaic_0001>
module attributes {stable_mosaic.version = 11 : i64} {
  func.func @eta_kernel(%arg0: i32, %arg1: memref<8x128xbf16, #tpu.memory_space<vmem>>, %arg2: memref<1536x128xbf16, #tpu.memory_space<vmem>>, %arg3: memref<8x128xf32, #tpu.memory_space<vmem>>) attributes {dimension_semantics = [#tpu.dimension_semantics<parallel>], iteration_bounds = array<i64: 1>, scalar_prefetch = 0 : i64, scratch_operands = 0 : i64, tpu.core_type = #tpu.core_type<tc>, window_params = [{transform_indices = @transform_0, window_bounds = array<i64: 8, 128>}, {pipeline_mode = #tpu.pipeline_mode<synchronous>, transform_indices = @transform_1, window_bounds = array<i64: 1536, 128>}, {transform_indices = @transform_2, window_bounds = array<i64: 8, 128>}]} {
    %0 = tpu.iota {dimensions = array<i32: 1>} : vector<1x128xi32>
    %c0 = arith.constant 0 : index
    %c0_0 = arith.constant 0 : index
    %1 = vector.load %arg1[%c0, %c0_0] : memref<8x128xbf16, #tpu.memory_space<vmem>>, vector<8x128xbf16>
    %c0_1 = arith.constant 0 : index
    %c0_2 = arith.constant 0 : index
    %2 = vector.load %arg2[%c0_1, %c0_2] : memref<1536x128xbf16, #tpu.memory_space<vmem>>, vector<128x128xbf16>
    %cst = arith.constant dense<0.000000e+00> : vector<8x128xf32>
    %3 = tpu.matmul %1, %2, %cst {dimension_numbers = #tpu.dot_dimension_numbers<[1], [0], [0], [1], [0, 0, 1, 1], [], []>} : vector<8x128xbf16>, vector<128x128xbf16>, vector<8x128xf32> -> vector<8x128xf32>
    %c28_i32 = arith.constant 28 : i32
    %4 = vector.broadcast %c28_i32 : i32 to vector<1x128xi32>
    %5 = arith.cmpi sge, %0, %4 : vector<1x128xi32>
    %cst_3 = arith.constant 0.000000e+00 : f32
    %6 = vector.broadcast %cst_3 : f32 to vector<8x128xf32>
    %7 = arith.maximumf %3, %6 : vector<8x128xf32>
    %8 = vector.shape_cast %5 : vector<1x128xi1> to vector<1x128xi1>
    %9 = vector.broadcast %8 : vector<1x128xi1> to vector<8x128xi1>
    %10 = arith.select %9, %7, %3 : vector<8x128xi1>, vector<8x128xf32>
    %11 = arith.truncf %10 : vector<8x128xf32> to vector<8x128xbf16>
    %c128 = arith.constant 128 : index
    %c0_4 = arith.constant 0 : index
    %12 = vector.load %arg2[%c128, %c0_4] : memref<1536x128xbf16, #tpu.memory_space<vmem>>, vector<128x128xbf16>
    %cst_5 = arith.constant dense<0.000000e+00> : vector<8x128xf32>
    %13 = tpu.matmul %11, %12, %cst_5 {dimension_numbers = #tpu.dot_dimension_numbers<[1], [0], [0], [1], [0, 0, 1, 1], [], []>} : vector<8x128xbf16>, vector<128x128xbf16>, vector<8x128xf32> -> vector<8x128xf32>
    %c16_i32 = arith.constant 16 : i32
    %14 = vector.broadcast %c16_i32 : i32 to vector<1x128xi32>
    %15 = arith.cmpi sge, %0, %14 : vector<1x128xi32>
    %cst_6 = arith.constant 0.000000e+00 : f32
    %16 = vector.broadcast %cst_6 : f32 to vector<8x128xf32>
    %17 = arith.maximumf %13, %16 : vector<8x128xf32>
    %18 = vector.shape_cast %15 : vector<1x128xi1> to vector<1x128xi1>
    %19 = vector.broadcast %18 : vector<1x128xi1> to vector<8x128xi1>
    %20 = arith.select %19, %17, %13 : vector<8x128xi1>, vector<8x128xf32>
    %21 = arith.truncf %20 : vector<8x128xf32> to vector<8x128xbf16>
    %c256 = arith.constant 256 : index
    %c0_7 = arith.constant 0 : index
    %22 = vector.load %arg2[%c256, %c0_7] : memref<1536x128xbf16, #tpu.memory_space<vmem>>, vector<128x128xbf16>
    %cst_8 = arith.constant dense<0.000000e+00> : vector<8x128xf32>
    %23 = tpu.matmul %1, %22, %cst_8 {dimension_numbers = #tpu.dot_dimension_numbers<[1], [0], [0], [1], [0, 0, 1, 1], [], []>} : vector<8x128xbf16>, vector<128x128xbf16>, vector<8x128xf32> -> vector<8x128xf32>
    %c384 = arith.constant 384 : index
    %c0_9 = arith.constant 0 : index
    %24 = vector.load %arg2[%c384, %c0_9] : memref<1536x128xbf16, #tpu.memory_space<vmem>>, vector<128x128xbf16>
    %cst_10 = arith.constant dense<0.000000e+00> : vector<8x128xf32>
    %25 = tpu.matmul %11, %24, %cst_10 {dimension_numbers = #tpu.dot_dimension_numbers<[1], [0], [0], [1], [0, 0, 1, 1], [], []>} : vector<8x128xbf16>, vector<128x128xbf16>, vector<8x128xf32> -> vector<8x128xf32>
    %26 = arith.addf %23, %25 : vector<8x128xf32>
    %c512 = arith.constant 512 : index
    %c0_11 = arith.constant 0 : index
    %27 = vector.load %arg2[%c512, %c0_11] : memref<1536x128xbf16, #tpu.memory_space<vmem>>, vector<128x128xbf16>
    %cst_12 = arith.constant dense<0.000000e+00> : vector<8x128xf32>
    %28 = tpu.matmul %21, %27, %cst_12 {dimension_numbers = #tpu.dot_dimension_numbers<[1], [0], [0], [1], [0, 0, 1, 1], [], []>} : vector<8x128xbf16>, vector<128x128xbf16>, vector<8x128xf32> -> vector<8x128xf32>
    %29 = arith.addf %26, %28 : vector<8x128xf32>
    %cst_13 = arith.constant 0.000000e+00 : f32
    %30 = vector.broadcast %cst_13 : f32 to vector<8x128xf32>
    %31 = arith.maximumf %29, %30 : vector<8x128xf32>
    %32 = arith.truncf %31 : vector<8x128xf32> to vector<8x128xbf16>
    %c640 = arith.constant 640 : index
    %c0_14 = arith.constant 0 : index
    %33 = vector.load %arg2[%c640, %c0_14] : memref<1536x128xbf16, #tpu.memory_space<vmem>>, vector<128x128xbf16>
    %cst_15 = arith.constant dense<0.000000e+00> : vector<8x128xf32>
    %34 = tpu.matmul %32, %33, %cst_15 {dimension_numbers = #tpu.dot_dimension_numbers<[1], [0], [0], [1], [0, 0, 1, 1], [], []>} : vector<8x128xbf16>, vector<128x128xbf16>, vector<8x128xf32> -> vector<8x128xf32>
    %c768 = arith.constant 768 : index
    %c0_16 = arith.constant 0 : index
    %35 = vector.load %arg2[%c768, %c0_16] : memref<1536x128xbf16, #tpu.memory_space<vmem>>, vector<128x128xbf16>
    %cst_17 = arith.constant dense<0.000000e+00> : vector<8x128xf32>
    %36 = tpu.matmul %11, %35, %cst_17 {dimension_numbers = #tpu.dot_dimension_numbers<[1], [0], [0], [1], [0, 0, 1, 1], [], []>} : vector<8x128xbf16>, vector<128x128xbf16>, vector<8x128xf32> -> vector<8x128xf32>
    %37 = arith.addf %34, %36 : vector<8x128xf32>
    %cst_18 = arith.constant 0.000000e+00 : f32
    %38 = vector.broadcast %cst_18 : f32 to vector<8x128xf32>
    %39 = arith.maximumf %37, %38 : vector<8x128xf32>
    %40 = arith.truncf %39 : vector<8x128xf32> to vector<8x128xbf16>
    %c896 = arith.constant 896 : index
    %c0_19 = arith.constant 0 : index
    %41 = vector.load %arg2[%c896, %c0_19] : memref<1536x128xbf16, #tpu.memory_space<vmem>>, vector<128x128xbf16>
    %cst_20 = arith.constant dense<0.000000e+00> : vector<8x128xf32>
    %42 = tpu.matmul %40, %41, %cst_20 {dimension_numbers = #tpu.dot_dimension_numbers<[1], [0], [0], [1], [0, 0, 1, 1], [], []>} : vector<8x128xbf16>, vector<128x128xbf16>, vector<8x128xf32> -> vector<8x128xf32>
    %c1024 = arith.constant 1024 : index
    %c0_21 = arith.constant 0 : index
    %43 = vector.load %arg2[%c1024, %c0_21] : memref<1536x128xbf16, #tpu.memory_space<vmem>>, vector<128x128xbf16>
    %cst_22 = arith.constant dense<0.000000e+00> : vector<8x128xf32>
    %44 = tpu.matmul %11, %43, %cst_22 {dimension_numbers = #tpu.dot_dimension_numbers<[1], [0], [0], [1], [0, 0, 1, 1], [], []>} : vector<8x128xbf16>, vector<128x128xbf16>, vector<8x128xf32> -> vector<8x128xf32>
    %45 = arith.addf %42, %44 : vector<8x128xf32>
    %c1152 = arith.constant 1152 : index
    %c0_23 = arith.constant 0 : index
    %46 = vector.load %arg2[%c1152, %c0_23] : memref<1536x128xbf16, #tpu.memory_space<vmem>>, vector<128x128xbf16>
    %cst_24 = arith.constant dense<0.000000e+00> : vector<8x128xf32>
    %47 = tpu.matmul %21, %46, %cst_24 {dimension_numbers = #tpu.dot_dimension_numbers<[1], [0], [0], [1], [0, 0, 1, 1], [], []>} : vector<8x128xbf16>, vector<128x128xbf16>, vector<8x128xf32> -> vector<8x128xf32>
    %48 = arith.addf %45, %47 : vector<8x128xf32>
    %cst_25 = arith.constant 0.000000e+00 : f32
    %49 = vector.broadcast %cst_25 : f32 to vector<8x128xf32>
    %50 = arith.maximumf %48, %49 : vector<8x128xf32>
    %51 = arith.truncf %50 : vector<8x128xf32> to vector<8x128xbf16>
    %c1280 = arith.constant 1280 : index
    %c0_26 = arith.constant 0 : index
    %52 = vector.load %arg2[%c1280, %c0_26] : memref<1536x128xbf16, #tpu.memory_space<vmem>>, vector<128x128xbf16>
    %cst_27 = arith.constant dense<0.000000e+00> : vector<8x128xf32>
    %53 = tpu.matmul %51, %52, %cst_27 {dimension_numbers = #tpu.dot_dimension_numbers<[1], [0], [0], [1], [0, 0, 1, 1], [], []>} : vector<8x128xbf16>, vector<128x128xbf16>, vector<8x128xf32> -> vector<8x128xf32>
    %cst_28 = arith.constant 0.000000e+00 : f32
    %54 = vector.broadcast %cst_28 : f32 to vector<8x128xf32>
    %55 = arith.maximumf %53, %54 : vector<8x128xf32>
    %56 = arith.truncf %55 : vector<8x128xf32> to vector<8x128xbf16>
    %c1408 = arith.constant 1408 : index
    %c0_29 = arith.constant 0 : index
    %57 = vector.load %arg2[%c1408, %c0_29] : memref<1536x128xbf16, #tpu.memory_space<vmem>>, vector<128x128xbf16>
    %cst_30 = arith.constant dense<0.000000e+00> : vector<8x128xf32>
    %58 = tpu.matmul %56, %57, %cst_30 {dimension_numbers = #tpu.dot_dimension_numbers<[1], [0], [0], [1], [0, 0, 1, 1], [], []>} : vector<8x128xbf16>, vector<128x128xbf16>, vector<8x128xf32> -> vector<8x128xf32>
    %c0_i32 = arith.constant 0 : i32
    %59 = vector.broadcast %c0_i32 : i32 to vector<1x128xi32>
    %60 = arith.cmpi eq, %0, %59 : vector<1x128xi32>
    %61 = arith.negf %58 : vector<8x128xf32>
    %62 = math.exp %61 : vector<8x128xf32>
    %cst_31 = arith.constant 1.000000e+00 : f32
    %63 = vector.broadcast %cst_31 : f32 to vector<8x128xf32>
    %64 = arith.addf %63, %62 : vector<8x128xf32>
    %65 = arith.divf %63, %64 : vector<8x128xf32>
    %cst_32 = arith.constant -1.000000e+01 : f32
    %cst_33 = arith.constant 5.000000e+00 : f32
    %66 = vector.broadcast %cst_32 : f32 to vector<8x128xf32>
    %67 = arith.maximumf %66, %58 : vector<8x128xf32>
    %68 = vector.broadcast %cst_33 : f32 to vector<8x128xf32>
    %69 = arith.minimumf %68, %67 : vector<8x128xf32>
    %70 = vector.shape_cast %60 : vector<1x128xi1> to vector<1x128xi1>
    %71 = vector.broadcast %70 : vector<1x128xi1> to vector<8x128xi1>
    %72 = arith.select %71, %65, %69 : vector<8x128xi1>, vector<8x128xf32>
    %c0_34 = arith.constant 0 : index
    %c0_35 = arith.constant 0 : index
    %73 = vector.load %arg3[%c0_34, %c0_35] : memref<8x128xf32, #tpu.memory_space<vmem>>, vector<8x128xf32>
    tpu.vector_store %arg3[%c0_34, %c0_35], %72 {strides = array<i32>} : memref<8x128xf32, #tpu.memory_space<vmem>>, vector<8x128xf32>,
    return
  }
  func.func @transform_0(%arg0: i32) -> (i32, i32) {
    %c0_i32 = arith.constant 0 : i32
    %c0_i32_0 = arith.constant 0 : i32
    return %arg0, %c0_i32 : i32, i32
  }
  func.func @transform_1(%arg0: i32) -> (i32, i32) {
    %c0_i32 = arith.constant 0 : i32
    %c0_i32_0 = arith.constant 0 : i32
    %c0_i32_1 = arith.constant 0 : i32
    return %c0_i32, %c0_i32_0 : i32, i32
  }
  func.func @transform_2(%arg0: i32) -> (i32, i32) {
    %c0_i32 = arith.constant 0 : i32
    %c0_i32_0 = arith.constant 0 : i32
    return %arg0, %c0_i32 : i32, i32
  }
}

</mosaic_0001>

<bundles_post_ra>
// kernel: first_eta_forward_pallas.1
= control target key start
LH: loop header
LB: loop body
LE: loop exit
PB: predicated region body
PF: predicated region fallthrough
CT: control target
= control target key end

     0   :  { %v1869_v0 = vmov 0.0   ;;  %vm1870_vm0 = vmmov 0   ;;  %v12_v26 = vlaneseq  ;;  %s2319_s1 = inlined_call_operand.vmem [shape: bf16[1536,128], index: 1, kind: input, shape index: {}]   ;;  %s2320_s0 = inlined_call_operand.vmem [shape: bf16[8,128], index: 0, kind: input, shape index: {}]   ;;  %s2321_s2 = inlined_call_operand.vmem [shape: f32[8,128], index: 2, kind: output, shape index: {}]  }
   0x1   :  { %1507 = vmatprep.subr.bf16.mxu0 %v1869_v0  ;;  %v1769_v1 = vld [vmem:[%s2319_s1] sm:$0xff]   ;;  %1523 = vmatprep.mubr.msk.bf16.mxu0 %vm1870_vm0, %v1869_v0  ;;  %v1770_v2 = vld [vmem:[%s2319_s1 + $0x8] sm:$0xff]   ;;  %v1771_v3 = vld [vmem:[%s2319_s1 + $0x10] sm:$0xff]  }
   0x2   :  { %1527 = vmatprep.subr.bf16.mxu1 %v1869_v0  ;;  %1543 = vmatprep.mubr.msk.bf16.mxu1 %vm1870_vm0, %v1869_v0  ;;  %v1777_v4 = vld [vmem:[%s2319_s1 + $0x40] sm:$0xff]   ;;  %v1772_v5 = vld [vmem:[%s2319_s1 + $0x18] sm:$0xff]   ;;  %v1779_v6 = vld [vmem:[%s2319_s1 + $0x48] sm:$0xff]   ;;  %v1996_v27 = vand.u32 127, %v12_v26 }
   0x3   :  { %1508 = vmatpush3.bf16.msra.mxu0 %v1769_v1  ;;  %1528 = vmatpush3.bf16.msra.mxu1 %v1777_v4  ;;  %v1773_v7 = vld [vmem:[%s2319_s1 + $0x20] sm:$0xff]   ;;  %v1781_v8 = vld [vmem:[%s2319_s1 + $0x50] sm:$0xff]   ;;  %v1774_v9 = vld [vmem:[%s2319_s1 + $0x28] sm:$0xff]  }
   0x4   :  { %1509 = vmatprep.subr.bf16.mxu0 %v1869_v0  ;;  %1529 = vmatprep.subr.bf16.mxu1 %v1869_v0  ;;  %v1783_v10 = vld [vmem:[%s2319_s1 + $0x58] sm:$0xff]   ;;  %v1775_v11 = vld [vmem:[%s2319_s1 + $0x30] sm:$0xff]   ;;  %v1785_v12 = vld [vmem:[%s2319_s1 + $0x60] sm:$0xff]   ;;  %vm119_vm1 = vcmp.ge.s32.totalorder %v1996_v27, 28  ;;  %vm229_vm2 = vcmp.ge.s32.totalorder %v1996_v27, 16  ;;  %vm1285_vm3 = vcmp.eq.s32.totalorder %v1996_v27, 0 }
   0x5   :  { %v1776_v13 = vld [vmem:[%s2319_s1 + $0x38] sm:$0xff]   ;;  %v1787_v14 = vld [vmem:[%s2319_s1 + $0x68] sm:$0xff]   ;;  %v1948_v15 = vld [vmem:[%s2320_s0] sm:$0xf] }
   0x6   :  { %v1778_v16 = vld [vmem:[%s2319_s1 + $0xc0] sm:$0xff]   ;;  %v1789_v17 = vld [vmem:[%s2319_s1 + $0x70] sm:$0xff]   ;;  %v1780_v18 = vld [vmem:[%s2319_s1 + $0xc8] sm:$0xff]  }
   0x7   :  { %1510 = vmatpush3.bf16.msra.mxu0 %v1770_v2  ;;  %1530 = vmatpush3.bf16.msra.mxu1 %v1779_v6  ;;  %v1782_v19 = vld [vmem:[%s2319_s1 + $0xd0] sm:$0xff]   ;;  %v1784_v20 = vld [vmem:[%s2319_s1 + $0xd8] sm:$0xff]   ;;  %v1786_v21 = vld [vmem:[%s2319_s1 + $0xe0] sm:$0xff]  }
   0x8   :  { %1511 = vmatprep.subr.bf16.mxu0 %v1869_v0  ;;  %1531 = vmatprep.subr.bf16.mxu1 %v1869_v0  ;;  %v1788_v22 = vld [vmem:[%s2319_s1 + $0xe8] sm:$0xff]   ;;  %v1790_v23 = vld [vmem:[%s2319_s1 + $0xf0] sm:$0xff]   ;;  %v1791_v24 = vld [vmem:[%s2319_s1 + $0x78] sm:$0xff]  }
   0x9   :  { %v1792_v25 = vld [vmem:[%s2319_s1 + $0xf8] sm:$0xff]   ;;  %v1793_v34 = vld [vmem:[%s2319_s1 + $0x180] sm:$0xff]   ;;  %v1794_v37 = vld [vmem:[%s2319_s1 + $0x188] sm:$0xff]  }
   0xa   :  { %v1801_v36 = vld [vmem:[%s2319_s1 + $0x80] sm:$0xff]   ;;  %v1802_v38 = vld [vmem:[%s2319_s1 + $0x88] sm:$0xff]   ;;  %v1795_v39 = vld [vmem:[%s2319_s1 + $0x190] sm:$0xff]  }
   0xb   :  { %1512 = vmatpush3.bf16.msra.mxu0 %v1771_v3  ;;  %1532 = vmatpush3.bf16.msra.mxu1 %v1781_v8  ;;  %v1803_v40 = vld [vmem:[%s2319_s1 + $0x90] sm:$0xff]   ;;  %v1796_v41 = vld [vmem:[%s2319_s1 + $0x198] sm:$0xff]   ;;  %v1797_v43 = vld [vmem:[%s2319_s1 + $0x1a0] sm:$0xff]  }
   0xc   :  { %1513 = vmatprep.subr.bf16.mxu0 %v1869_v0  ;;  %1533 = vmatprep.subr.bf16.mxu1 %v1869_v0  ;;  %v1804_v42 = vld [vmem:[%s2319_s1 + $0x98] sm:$0xff]   ;;  %v1805_v44 = vld [vmem:[%s2319_s1 + $0xa0] sm:$0xff]   ;;  %v1798_v45 = vld [vmem:[%s2319_s1 + $0x1a8] sm:$0xff]  }
   0xd   :  { %v1806_v46 = vld [vmem:[%s2319_s1 + $0xa8] sm:$0xff]   ;;  %v1799_v47 = vld [vmem:[%s2319_s1 + $0x1b0] sm:$0xff]   ;;  %v1800_v49 = vld [vmem:[%s2319_s1 + $0x1b8] sm:$0xff]  }
   0xe   :  { %v1807_v48 = vld [vmem:[%s2319_s1 + $0xb0] sm:$0xff]   ;;  %v1808_v50 = vld [vmem:[%s2319_s1 + $0xb8] sm:$0xff]   ;;  %v1809_v51 = vld [vmem:[%s2319_s1 + $0x100] sm:$0xff]  }
   0xf   :  { %1514 = vmatpush3.bf16.msra.mxu0 %v1772_v5  ;;  %1534 = vmatpush3.bf16.msra.mxu1 %v1783_v10  ;;  %v1810_v52 = vld [vmem:[%s2319_s1 + $0x108] sm:$0xff]   ;;  %v1811_v53 = vld [vmem:[%s2319_s1 + $0x110] sm:$0xff]   ;;  %v1812_v54 = vld [vmem:[%s2319_s1 + $0x118] sm:$0xff]  }
  0x10   :  { %1515 = vmatprep.subr.bf16.mxu0 %v1869_v0  ;;  %1535 = vmatprep.subr.bf16.mxu1 %v1869_v0  ;;  %v1813_v55 = vld [vmem:[%s2319_s1 + $0x120] sm:$0xff]   ;;  %v1814_v56 = vld [vmem:[%s2319_s1 + $0x128] sm:$0xff]   ;;  %v1815_v57 = vld [vmem:[%s2319_s1 + $0x130] sm:$0xff]  }
  0x11   :  { %v1816_v58 = vld [vmem:[%s2319_s1 + $0x138] sm:$0xff]   ;;  %v1817_v59 = vld [vmem:[%s2319_s1 + $0x140] sm:$0xff]   ;;  %v1818_v60 = vld [vmem:[%s2319_s1 + $0x148] sm:$0xff]  }
  0x12   :  { %v1819_v61 = vld [vmem:[%s2319_s1 + $0x150] sm:$0xff]   ;;  %v1820_v62 = vld [vmem:[%s2319_s1 + $0x158] sm:$0xff]   ;;  %v1821_v63 = vld [vmem:[%s2319_s1 + $0x160] sm:$0xff]  }
  0x13   :  { %1516 = vmatpush3.bf16.msra.mxu0 %v1773_v7  ;;  %1536 = vmatpush3.bf16.msra.mxu1 %v1785_v12  ;;  %v1822_v1 = vld [vmem:[%s2319_s1 + $0x168] sm:$0xff]   ;;  %v1823_v2 = vld [vmem:[%s2319_s1 + $0x170] sm:$0xff]   ;;  %v1824_v10 = vld [vmem:[%s2319_s1 + $0x178] sm:$0xff]  }
  0x14   :  { %1517 = vmatprep.subr.bf16.mxu0 %v1869_v0  ;;  %1537 = vmatprep.subr.bf16.mxu1 %v1869_v0  ;;  %v1834_v26 = vld [vmem:[%s2319_s1 + $0x1c8] sm:$0xff]  }
  0x17   :  { %1518 = vmatpush3.bf16.msra.mxu0 %v1774_v9  ;;  %1538 = vmatpush3.bf16.msra.mxu1 %v1787_v14 }
  0x18   :  { %1519 = vmatprep.subr.bf16.mxu0 %v1869_v0  ;;  %1539 = vmatprep.subr.bf16.mxu1 %v1869_v0 }
  0x1b   :  { %1520 = vmatpush3.bf16.msra.mxu0 %v1775_v11  ;;  %1540 = vmatpush3.bf16.msra.mxu1 %v1789_v17 }
  0x1c   :  { %1521 = vmatprep.subr.bf16.mxu0 %v1869_v0  ;;  %1541 = vmatprep.subr.bf16.mxu1 %v1869_v0 }
  0x1f   :  { %1522 = vmatpush3.bf16.msra.mxu0 %v1776_v13  ;;  %1542 = vmatpush3.bf16.msra.mxu1 %v1791_v24  ;;  %v1832_v24 = vld [vmem:[%s2319_s1 + $0x238] sm:$0xff]  }
  0x20   :  { %1547 = vmatprep.subr.bf16.mxu0 %v1869_v0  ;;  %1607 = vmatprep.subr.bf16.mxu1 %v1869_v0 }
  0x22   :  { %1524 = vmatmul.mubr.bf16.vlgmr.msra.gmra.mrb[0].mxu0 %v1948_v15 }
  0x23   :  { %1548 = vmatpush3.bf16.msra.mxu0 %v1778_v16  ;;  %1563 = vmatprep.mubr.msk.bf16.mxu0 %vm1870_vm0, %v1869_v0 }
  0x24   :  { %1549 = vmatprep.subr.bf16.mxu0 %v1869_v0 }
  0x27   :  { %1550 = vmatpush3.bf16.msra.mxu0 %v1780_v18  ;;  %v1826_v18 = vld [vmem:[%s2319_s1 + $0x208] sm:$0xff]  }
  0x28   :  { %1551 = vmatprep.subr.bf16.mxu0 %v1869_v0 }
  0x2b   :  { %1552 = vmatpush3.bf16.msra.mxu0 %v1782_v19  ;;  %v1827_v19 = vld [vmem:[%s2319_s1 + $0x210] sm:$0xff]  }
  0x2c   :  { %1553 = vmatprep.subr.bf16.mxu0 %v1869_v0 }
  0x2f   :  { %1554 = vmatpush3.bf16.msra.mxu0 %v1784_v20  ;;  %v1828_v20 = vld [vmem:[%s2319_s1 + $0x218] sm:$0xff]  }
  0x30   :  { %1555 = vmatprep.subr.bf16.mxu0 %v1869_v0 }
  0x33   :  { %1556 = vmatpush3.bf16.msra.mxu0 %v1786_v21  ;;  %v1829_v21 = vld [vmem:[%s2319_s1 + $0x220] sm:$0xff]  }
  0x34   :  { %1557 = vmatprep.subr.bf16.mxu0 %v1869_v0 }
  0x37   :  { %1558 = vmatpush3.bf16.msra.mxu0 %v1788_v22  ;;  %v1830_v22 = vld [vmem:[%s2319_s1 + $0x228] sm:$0xff]  }
  0x38   :  { %1559 = vmatprep.subr.bf16.mxu0 %v1869_v0 }
  0x3b   :  { %1560 = vmatpush3.bf16.msra.mxu0 %v1790_v23  ;;  %v1831_v23 = vld [vmem:[%s2319_s1 + $0x230] sm:$0xff]  }
  0x3c   :  { %1561 = vmatprep.subr.bf16.mxu0 %v1869_v0 }
  0x3f   :  { %1562 = vmatpush3.bf16.msra.mxu0 %v1792_v25  ;;  %v1833_v25 = vld [vmem:[%s2319_s1 + $0x1c0] sm:$0xff]  }
  0x40   :  { %1567 = vmatprep.subr.bf16.mxu0 %v1869_v0 }
  0xf5   :  { %v113_v28 = vpop.f32.mrb[0].mxu0 }
  0xf6   :  { %v120_v29 = vmax.f32 %v113_v28, 0.0  ;;  %v1525_v30 = vpop.f32.mrb[1].mxu0 }
  0xf7   :  { %v116_v31 = vpop.f32.mrb[2].mxu0  ;;  %v1837_v30 = vld [vmem:[%s2319_s1 + $0x1e0] sm:$0xff]  }
  0xf8   :  { %v123_v32 = vsel %vm119_vm1, %v120_v29, %v113_v28  ;;  %v1526_v33 = vpop.f32.mrb[3].mxu0  ;;  %v1835_v28 = vld [vmem:[%s2319_s1 + $0x1d0] sm:$0xff]   ;;  %v1836_v29 = vld [vmem:[%s2319_s1 + $0x1d8] sm:$0xff]   ;;  %v1838_v31 = vld [vmem:[%s2319_s1 + $0x1e8] sm:$0xff]  }
  0xf9   :  { %v2002_v35 = vpack.c.bf16 %v123_v32, %v123_v32  ;;  %v1839_v32 = vld [vmem:[%s2319_s1 + $0x1f0] sm:$0xff]   ;;  %v1840_v33 = vld [vmem:[%s2319_s1 + $0x1f8] sm:$0xff]  }
  0xfb   :  { %1544 = vmatmul.mubr.bf16.vlgmr.msra.gmra.mrb[0].mxu1 %v2002_v35  ;;  %1564 = vmatmul.mubr.bf16.vlgmr.msra.gmra.mrb[4].mxu0 %v2002_v35 }
  0xfc   :  { %1608 = vmatpush3.bf16.msra.mxu1 %v1793_v34  ;;  %1623 = vmatprep.mubr.msk.bf16.mxu1 %vm1870_vm0, %v1869_v0  ;;  %v1849_v34 = vld [vmem:[%s2319_s1 + $0x280] sm:$0xff]  }
  0xfd   :  { %1609 = vmatprep.subr.bf16.mxu1 %v1869_v0  ;;  %1568 = vmatpush3.bf16.msra.mxu0 %v1801_v36  ;;  %v1851_v36 = vld [vmem:[%s2319_s1 + $0x290] sm:$0xff]  }
  0xfe   :  { %1569 = vmatprep.subr.bf16.mxu0 %v1869_v0  ;;  %1583 = vmatprep.mubr.msk.bf16.mxu0 %vm1870_vm0, %v1869_v0 }
 0x100   :  { %1610 = vmatpush3.bf16.msra.mxu1 %v1794_v37  ;;  %v1852_v37 = vld [vmem:[%s2319_s1 + $0x298] sm:$0xff]  }
 0x101   :  { %1611 = vmatprep.subr.bf16.mxu1 %v1869_v0  ;;  %1570 = vmatpush3.bf16.msra.mxu0 %v1802_v38  ;;  %v1853_v38 = vld [vmem:[%s2319_s1 + $0x2a0] sm:$0xff]  }
 0x102   :  { %1571 = vmatprep.subr.bf16.mxu0 %v1869_v0 }
 0x104   :  { %1612 = vmatpush3.bf16.msra.mxu1 %v1795_v39  ;;  %v1854_v39 = vld [vmem:[%s2319_s1 + $0x2a8] sm:$0xff]  }
 0x105   :  { %1613 = vmatprep.subr.bf16.mxu1 %v1869_v0  ;;  %1572 = vmatpush3.bf16.msra.mxu0 %v1803_v40  ;;  %v1855_v40 = vld [vmem:[%s2319_s1 + $0x2b0] sm:$0xff]  }
 0x106   :  { %1573 = vmatprep.subr.bf16.mxu0 %v1869_v0 }
 0x108   :  { %1614 = vmatpush3.bf16.msra.mxu1 %v1796_v41 }
 0x109   :  { %1615 = vmatprep.subr.bf16.mxu1 %v1869_v0  ;;  %1574 = vmatpush3.bf16.msra.mxu0 %v1804_v42 }
 0x10a   :  { %1575 = vmatprep.subr.bf16.mxu0 %v1869_v0 }
 0x10c   :  { %1616 = vmatpush3.bf16.msra.mxu1 %v1797_v43 }
 0x10d   :  { %1617 = vmatprep.subr.bf16.mxu1 %v1869_v0  ;;  %1576 = vmatpush3.bf16.msra.mxu0 %v1805_v44 }
 0x10e   :  { %1577 = vmatprep.subr.bf16.mxu0 %v1869_v0 }
 0x110   :  { %1618 = vmatpush3.bf16.msra.mxu1 %v1798_v45  ;;  %v1841_v45 = vld [vmem:[%s2319_s1 + $0x240] sm:$0xff]  }
 0x111   :  { %1619 = vmatprep.subr.bf16.mxu1 %v1869_v0  ;;  %1578 = vmatpush3.bf16.msra.mxu0 %v1806_v46 }
 0x112   :  { %1579 = vmatprep.subr.bf16.mxu0 %v1869_v0 }
 0x114   :  { %1620 = vmatpush3.bf16.msra.mxu1 %v1799_v47 }
 0x115   :  { %1621 = vmatprep.subr.bf16.mxu1 %v1869_v0  ;;  %1580 = vmatpush3.bf16.msra.mxu0 %v1807_v48  ;;  %v1842_v48 = vld [vmem:[%s2319_s1 + $0x248] sm:$0xff]  }
 0x116   :  { %1581 = vmatprep.subr.bf16.mxu0 %v1869_v0 }
 0x118   :  { %1622 = vmatpush3.bf16.msra.mxu1 %v1800_v49  ;;  %v1843_v49 = vld [vmem:[%s2319_s1 + $0x250] sm:$0xff]  }
 0x119   :  { %1582 = vmatpush3.bf16.msra.mxu0 %v1808_v50  ;;  %1627 = vmatprep.subr.bf16.mxu1 %v1869_v0  ;;  %v1844_v50 = vld [vmem:[%s2319_s1 + $0x258] sm:$0xff]  }
 0x11a   :  { %1587 = vmatprep.subr.bf16.mxu0 %v1869_v0 }
 0x11b   :  { %1624 = vmatmul.mubr.bf16.vlgmr.msra.gmra.mrb[4].mxu1 %v2002_v35 }
 0x11c   :  { %1584 = vmatmul.mubr.bf16.vlgmr.msra.gmra.mrb[4].mxu0 %v1948_v15  ;;  %1643 = vmatprep.mubr.msk.bf16.mxu1 %vm1870_vm0, %v1869_v0  ;;  %v1825_v15 = vld [vmem:[%s2319_s1 + $0x200] sm:$0xff]  }
 0x11d   :  { %1588 = vmatpush3.bf16.msra.mxu0 %v1809_v51  ;;  %1603 = vmatprep.mubr.msk.bf16.mxu0 %vm1870_vm0, %v1869_v0  ;;  %v1845_v51 = vld [vmem:[%s2319_s1 + $0x260] sm:$0xff]  }
 0x11e   :  { %1589 = vmatprep.subr.bf16.mxu0 %v1869_v0  ;;  %1628 = vmatpush3.bf16.msra.mxu1 %v1817_v59 }
 0x11f   :  { %1629 = vmatprep.subr.bf16.mxu1 %v1869_v0 }
 0x121   :  { %1590 = vmatpush3.bf16.msra.mxu0 %v1810_v52  ;;  %v1846_v52 = vld [vmem:[%s2319_s1 + $0x268] sm:$0xff]  }
 0x122   :  { %1591 = vmatprep.subr.bf16.mxu0 %v1869_v0  ;;  %1630 = vmatpush3.bf16.msra.mxu1 %v1818_v60  ;;  %v1857_v60 = vld [vmem:[%s2319_s1 + $0x2c0] sm:$0xff]  }
 0x123   :  { %1631 = vmatprep.subr.bf16.mxu1 %v1869_v0 }
 0x125   :  { %1592 = vmatpush3.bf16.msra.mxu0 %v1811_v53  ;;  %v1847_v53 = vld [vmem:[%s2319_s1 + $0x270] sm:$0xff]  }
 0x126   :  { %1593 = vmatprep.subr.bf16.mxu0 %v1869_v0  ;;  %1632 = vmatpush3.bf16.msra.mxu1 %v1819_v61 }
 0x127   :  { %1633 = vmatprep.subr.bf16.mxu1 %v1869_v0 }
 0x129   :  { %1594 = vmatpush3.bf16.msra.mxu0 %v1812_v54  ;;  %v1848_v54 = vld [vmem:[%s2319_s1 + $0x278] sm:$0xff]  }
 0x12a   :  { %1595 = vmatprep.subr.bf16.mxu0 %v1869_v0  ;;  %1634 = vmatpush3.bf16.msra.mxu1 %v1820_v62 }
 0x12b   :  { %1635 = vmatprep.subr.bf16.mxu1 %v1869_v0 }
 0x12d   :  { %1596 = vmatpush3.bf16.msra.mxu0 %v1813_v55  ;;  %v1856_v55 = vld [vmem:[%s2319_s1 + $0x2b8] sm:$0xff]  }
 0x12e   :  { %1597 = vmatprep.subr.bf16.mxu0 %v1869_v0  ;;  %1636 = vmatpush3.bf16.msra.mxu1 %v1821_v63  ;;  %v1858_v63 = vld [vmem:[%s2319_s1 + $0x2c8] sm:$0xff]  }
 0x12f   :  { %1637 = vmatprep.subr.bf16.mxu1 %v1869_v0 }
 0x131   :  { %1598 = vmatpush3.bf16.msra.mxu0 %v1814_v56 }
 0x132   :  { %1599 = vmatprep.subr.bf16.mxu0 %v1869_v0  ;;  %1638 = vmatpush3.bf16.msra.mxu1 %v1822_v1  ;;  %v1859_v1 = vld [vmem:[%s2319_s1 + $0x2d0] sm:$0xff]  }
 0x133   :  { %1639 = vmatprep.subr.bf16.mxu1 %v1869_v0 }
 0x135   :  { %1600 = vmatpush3.bf16.msra.mxu0 %v1815_v57 }
 0x136   :  { %1601 = vmatprep.subr.bf16.mxu0 %v1869_v0  ;;  %1640 = vmatpush3.bf16.msra.mxu1 %v1823_v2  ;;  %v1860_v2 = vld [vmem:[%s2319_s1 + $0x2d8] sm:$0xff]  }
 0x137   :  { %1641 = vmatprep.subr.bf16.mxu1 %v1869_v0 }
 0x139   :  { %1602 = vmatpush3.bf16.msra.mxu0 %v1816_v58 }
 0x13a   :  { %1707 = vmatprep.subr.bf16.mxu0 %v1869_v0  ;;  %1642 = vmatpush3.bf16.msra.mxu1 %v1824_v10 }
 0x13b   :  { %1647 = vmatprep.subr.bf16.mxu1 %v1869_v0 }
 0x1ce   :  { %v223_v3 = vpop.f32.mrb[0].mxu1 }
 0x1cf   :  { %v230_v4 = vmax.f32 %v223_v3, 0.0  ;;  %v1545_v5 = vpop.f32.mrb[1].mxu1 }
 0x1d0   :  { %v226_v6 = vpop.f32.mrb[2].mxu1  ;;  %v1863_v5 = vld [vmem:[%s2319_s1 + $0x2f0] sm:$0xff]  }
 0x1d1   :  { %v233_v7 = vsel %vm229_vm2, %v230_v4, %v223_v3  ;;  %v1546_v8 = vpop.f32.mrb[3].mxu1  ;;  %v1861_v3 = vld [vmem:[%s2319_s1 + $0x2e0] sm:$0xff]   ;;  %v1862_v4 = vld [vmem:[%s2319_s1 + $0x2e8] sm:$0xff]   ;;  %v1864_v6 = vld [vmem:[%s2319_s1 + $0x2f8] sm:$0xff]  }
 0x1d2   :  { %v2138_v9 = vpack.c.bf16 %v233_v7, %v233_v7 }
 0x1d4   :  { %1604 = vmatmul.mubr.bf16.vlgmr.msra.gmra.mrb[4].mxu0 %v2138_v9 }
 0x1d5   :  { %1723 = vmatprep.mubr.msk.bf16.mxu0 %vm1870_vm0, %v1869_v0  ;;  %1708 = vmatpush3.bf16.msra.mxu0 %v1849_v34 }
 0x1d6   :  { %1709 = vmatprep.subr.bf16.mxu0 %v1869_v0 }
 0x2a7   :  { %v541_v11 = vpop.f32.mrb[4].mxu0 }
 0x2a8   :  { %v548_v12 = vmax.f32 %v541_v11, 0.0  ;;  %v1605_v13 = vpop.f32.mrb[5].mxu0 }
 0x2a9   :  { %v544_v14 = vpop.f32.mrb[6].mxu0 }
 0x2aa   :  { %v549_v16 = vpack.c.bf16 %v548_v12, %v548_v12  ;;  %v1606_v17 = vpop.f32.mrb[7].mxu0 }
 0x2ac   :  { %1644 = vmatmul.mubr.bf16.vlgmr.msra.gmra.mrb[4].mxu1 %v549_v16 }
 0x2ad   :  { %1648 = vmatpush3.bf16.msra.mxu1 %v1825_v15  ;;  %1663 = vmatprep.mubr.msk.bf16.mxu1 %vm1870_vm0, %v1869_v0 }
 0x2ae   :  { %1649 = vmatprep.subr.bf16.mxu1 %v1869_v0 }
 0x2b1   :  { %1650 = vmatpush3.bf16.msra.mxu1 %v1826_v18 }
 0x2b2   :  { %1651 = vmatprep.subr.bf16.mxu1 %v1869_v0 }
 0x2b5   :  { %1652 = vmatpush3.bf16.msra.mxu1 %v1827_v19 }
 0x2b6   :  { %1653 = vmatprep.subr.bf16.mxu1 %v1869_v0 }
 0x2b9   :  { %1654 = vmatpush3.bf16.msra.mxu1 %v1828_v20 }
 0x2ba   :  { %1655 = vmatprep.subr.bf16.mxu1 %v1869_v0 }
 0x2bd   :  { %1656 = vmatpush3.bf16.msra.mxu1 %v1829_v21 }
 0x2be   :  { %1657 = vmatprep.subr.bf16.mxu1 %v1869_v0 }
 0x2c1   :  { %1658 = vmatpush3.bf16.msra.mxu1 %v1830_v22 }
 0x2c2   :  { %1659 = vmatprep.subr.bf16.mxu1 %v1869_v0 }
 0x2c5   :  { %1660 = vmatpush3.bf16.msra.mxu1 %v1831_v23 }
 0x2c6   :  { %1661 = vmatprep.subr.bf16.mxu1 %v1869_v0 }
 0x2c9   :  { %1662 = vmatpush3.bf16.msra.mxu1 %v1832_v24 }
 0x2ca   :  { %1667 = vmatprep.subr.bf16.mxu1 %v1869_v0 }
 0x2cc   :  { %1664 = vmatmul.mubr.bf16.vlgmr.msra.gmra.mrb[8].mxu1 %v2002_v35  ;;  %v1850_v35 = vld [vmem:[%s2319_s1 + $0x288] sm:$0xff]  }
 0x2cd   :  { %1668 = vmatpush3.bf16.msra.mxu1 %v1833_v25  ;;  %1683 = vmatprep.mubr.msk.bf16.mxu1 %vm1870_vm0, %v1869_v0 }
 0x2ce   :  { %1669 = vmatprep.subr.bf16.mxu1 %v1869_v0  ;;  %1710 = vmatpush3.bf16.msra.mxu0 %v1850_v35 }
 0x2cf   :  { %1711 = vmatprep.subr.bf16.mxu0 %v1869_v0 }
 0x2d1   :  { %1670 = vmatpush3.bf16.msra.mxu1 %v1834_v26 }
 0x2d2   :  { %1671 = vmatprep.subr.bf16.mxu1 %v1869_v0  ;;  %1712 = vmatpush3.bf16.msra.mxu0 %v1851_v36 }
 0x2d3   :  { %1713 = vmatprep.subr.bf16.mxu0 %v1869_v0 }
 0x2d5   :  { %1672 = vmatpush3.bf16.msra.mxu1 %v1835_v28 }
 0x2d6   :  { %1673 = vmatprep.subr.bf16.mxu1 %v1869_v0  ;;  %1714 = vmatpush3.bf16.msra.mxu0 %v1852_v37 }
 0x2d7   :  { %1715 = vmatprep.subr.bf16.mxu0 %v1869_v0 }
 0x2d9   :  { %1674 = vmatpush3.bf16.msra.mxu1 %v1836_v29 }
 0x2da   :  { %1675 = vmatprep.subr.bf16.mxu1 %v1869_v0  ;;  %1716 = vmatpush3.bf16.msra.mxu0 %v1853_v38 }
 0x2db   :  { %1717 = vmatprep.subr.bf16.mxu0 %v1869_v0 }
 0x2dd   :  { %1676 = vmatpush3.bf16.msra.mxu1 %v1837_v30 }
 0x2de   :  { %1677 = vmatprep.subr.bf16.mxu1 %v1869_v0  ;;  %1718 = vmatpush3.bf16.msra.mxu0 %v1854_v39 }
 0x2df   :  { %1719 = vmatprep.subr.bf16.mxu0 %v1869_v0 }
 0x2e1   :  { %1678 = vmatpush3.bf16.msra.mxu1 %v1838_v31 }
 0x2e2   :  { %1679 = vmatprep.subr.bf16.mxu1 %v1869_v0  ;;  %1720 = vmatpush3.bf16.msra.mxu0 %v1855_v40 }
 0x2e3   :  { %1721 = vmatprep.subr.bf16.mxu0 %v1869_v0 }
 0x2e5   :  { %1680 = vmatpush3.bf16.msra.mxu1 %v1839_v32 }
 0x2e6   :  { %1681 = vmatprep.subr.bf16.mxu1 %v1869_v0  ;;  %1722 = vmatpush3.bf16.msra.mxu0 %v1856_v55 }
 0x2e7   :  { %1727 = vmatprep.subr.bf16.mxu0 %v1869_v0 }
 0x2e9   :  { %1682 = vmatpush3.bf16.msra.mxu1 %v1840_v33 }
 0x2ea   :  { %1687 = vmatprep.subr.bf16.mxu1 %v1869_v0 }
 0x37f   :  { %v752_v41 = vpop.f32.mrb[4].mxu1 }
 0x380   :  { %v758_v42 = vmax.f32 %v752_v41, 0.0  ;;  %v1645_v43 = vpop.f32.mrb[5].mxu1 }
 0x381   :  { %v755_v44 = vpop.f32.mrb[6].mxu1 }
 0x382   :  { %v759_v46 = vpack.c.bf16 %v758_v42, %v758_v42  ;;  %v1646_v47 = vpop.f32.mrb[7].mxu1 }
 0x384   :  { %1684 = vmatmul.mubr.bf16.vlgmr.msra.gmra.mrb[8].mxu1 %v759_v46 }
 0x385   :  { %1688 = vmatpush3.bf16.msra.mxu1 %v1841_v45  ;;  %1703 = vmatprep.mubr.msk.bf16.mxu1 %vm1870_vm0, %v1869_v0 }
 0x386   :  { %1689 = vmatprep.subr.bf16.mxu1 %v1869_v0 }
 0x389   :  { %1690 = vmatpush3.bf16.msra.mxu1 %v1842_v48 }
 0x38a   :  { %1691 = vmatprep.subr.bf16.mxu1 %v1869_v0 }
 0x38d   :  { %1692 = vmatpush3.bf16.msra.mxu1 %v1843_v49 }
 0x38e   :  { %1693 = vmatprep.subr.bf16.mxu1 %v1869_v0 }
 0x391   :  { %1694 = vmatpush3.bf16.msra.mxu1 %v1844_v50 }
 0x392   :  { %1695 = vmatprep.subr.bf16.mxu1 %v1869_v0 }
 0x395   :  { %1696 = vmatpush3.bf16.msra.mxu1 %v1845_v51 }
 0x396   :  { %1697 = vmatprep.subr.bf16.mxu1 %v1869_v0 }
 0x399   :  { %1698 = vmatpush3.bf16.msra.mxu1 %v1846_v52 }
 0x39a   :  { %1699 = vmatprep.subr.bf16.mxu1 %v1869_v0 }
 0x39d   :  { %1700 = vmatpush3.bf16.msra.mxu1 %v1847_v53 }
 0x39e   :  { %1701 = vmatprep.subr.bf16.mxu1 %v1869_v0 }
 0x3a1   :  { %1702 = vmatpush3.bf16.msra.mxu1 %v1848_v54 }
 0x3a4   :  { %1704 = vmatmul.mubr.bf16.vlgmr.msra.gmra.mrb[8].mxu1 %v2138_v9 }
 0x477   :  { %v1066_v56 = vpop.f32.mrb[8].mxu1 }
 0x478   :  { %v1073_v57 = vmax.f32 %v1066_v56, 0.0  ;;  %v1705_v58 = vpop.f32.mrb[9].mxu1 }
 0x479   :  { %v1069_v59 = vpop.f32.mrb[10].mxu1 }
 0x47a   :  { %v1074_v61 = vpack.c.bf16 %v1073_v57, %v1073_v57  ;;  %v1706_v62 = vpop.f32.mrb[11].mxu1 }
 0x47c   :  { %1724 = vmatmul.mubr.bf16.vlgmr.msra.gmra.mrb[8].mxu0 %v1074_v61 }
 0x47d   :  { %1728 = vmatpush3.bf16.msra.mxu0 %v1857_v60  ;;  %1743 = vmatprep.mubr.msk.bf16.mxu0 %vm1870_vm0, %v1869_v0 }
 0x47e   :  { %1729 = vmatprep.subr.bf16.mxu0 %v1869_v0 }
 0x481   :  { %1730 = vmatpush3.bf16.msra.mxu0 %v1858_v63 }
 0x482   :  { %1731 = vmatprep.subr.bf16.mxu0 %v1869_v0 }
 0x485   :  { %1732 = vmatpush3.bf16.msra.mxu0 %v1859_v1 }
 0x486   :  { %1733 = vmatprep.subr.bf16.mxu0 %v1869_v0 }
 0x489   :  { %1734 = vmatpush3.bf16.msra.mxu0 %v1860_v2 }
 0x48a   :  { %1735 = vmatprep.subr.bf16.mxu0 %v1869_v0 }
 0x48d   :  { %1736 = vmatpush3.bf16.msra.mxu0 %v1861_v3 }
 0x48e   :  { %1737 = vmatprep.subr.bf16.mxu0 %v1869_v0 }
 0x491   :  { %1738 = vmatpush3.bf16.msra.mxu0 %v1862_v4 }
 0x492   :  { %1739 = vmatprep.subr.bf16.mxu0 %v1869_v0 }
 0x495   :  { %1740 = vmatpush3.bf16.msra.mxu0 %v1863_v5 }
 0x496   :  { %1741 = vmatprep.subr.bf16.mxu0 %v1869_v0 }
 0x499   :  { %1742 = vmatpush3.bf16.msra.mxu0 %v1864_v6 }
 0x54f   :  { %v1173_v7 = vpop.f32.mrb[8].mxu0 }
 0x550   :  { %v1179_v8 = vmax.f32 %v1173_v7, 0.0  ;;  %v1725_v9 = vpop.f32.mrb[9].mxu0 }
 0x551   :  { %v1176_v10 = vpop.f32.mrb[10].mxu0 }
 0x552   :  { %v1180_v11 = vpack.c.bf16 %v1179_v8, %v1179_v8  ;;  %v1726_v12 = vpop.f32.mrb[11].mxu0 }
 0x554   :  { %1744 = vmatmul.mubr.bf16.vlgmr.msra.gmra.mrb[12].mxu0 %v1180_v11 }
 0x627   :  { %v1279_v13 = vpop.f32.mrb[12].mxu0 }
 0x628   :  { %v1398_v14 = vmul.f32 -1.442695, %v1279_v13  ;;  %v1745_v15 = vpop.f32.mrb[13].mxu0  ;;  %v1292_v19 = vmax.f32 %v1279_v13, -10.0 }
 0x629   :  { %v1282_v16 = vpop.f32.mrb[14].mxu0 }
 0x62a   :  { %1865 = vpow2.f32 %v1398_v14  ;;  %v1746_v17 = vpop.f32.mrb[15].mxu0  ;;  %v1293_v20 = vmin.f32 %v1292_v19, 5.0 }
 0x634   :  { %v1866_v18 = vpop.eup %1865 }
 0x635   :  { %v1289_v0 = vadd.f32 1.0, %v1866_v18 }
 0x637   :  { %1867 = vrcp.f32 %v1289_v0 }
 0x641   :  { %v1868_v21 = vpop.eup %1867 }
 0x642   :  { %v1296_v22 = vsel %vm1285_vm3, %v1868_v21, %v1293_v20 }
 0x643   :  { %1297 = vst [vmem:[%s2321_s2] sm:$0xff] %v1296_v22 }

</bundles_post_ra>
